<compile_context>
chip_gen: v5e
topology: v5e:2x2
jax: 0.10.0
libtpu: 0.0.40
codegen_flags: <defaults>
</compile_context>

<pallas_src>
import functools

import jax
import jax.numpy as jnp
from jax.experimental import pallas as pl
from jax.experimental.pallas import tpu as pltpu


def travel_time_mlp_kernel(xr_ref, xs_ref,
                           w1r_ref, w1s_ref, b1_ref,
                           w2_ref, b2_ref,
                           w3_ref, b3_ref,
                           w4t_ref, b4_ref,
                           o_ref, *, mxu_dtype):
    """One batch tile of the 4-layer MLP, batch-on-lanes layout.

    xr_ref, xs_ref : [2, BT]   (receiver / source coords, transposed)
    w1r, w1s       : [50, 2]   (first-layer weight, split by input)
    b1, b2, b3     : [50, 1]
    w2, w3         : [50, 50]
    w4t            : [50, 1],  b4: [1, 1]
    o_ref          : [1, BT]   (lane-dense output tile)
    """
    xr = xr_ref[...]                       # [2, BT]
    xs = xs_ref[...]                       # [2, BT]
    w1r = w1r_ref[...]                     # [50, 2]
    w1s = w1s_ref[...]                     # [50, 2]

    # ---- Layer 1 on the VPU: rank-1 broadcast FMAs (K=4 is too small for MXU).
    h1 = jnp.tanh(
        w1r[:, 0:1] * xr[0:1, :]
        + w1r[:, 1:2] * xr[1:2, :]
        + w1s[:, 0:1] * xs[0:1, :]
        + w1s[:, 1:2] * xs[1:2, :]
        + b1_ref[...]
    )                                      # [50, BT] f32

    # ---- Layers 2 & 3 on the MXU (optionally bf16 operands, f32 accumulate).
    h2 = jnp.tanh(
        jnp.dot(w2_ref[...].astype(mxu_dtype), h1.astype(mxu_dtype),
                preferred_element_type=jnp.float32)
        + b2_ref[...]
    )
    h3 = jnp.tanh(
        jnp.dot(w3_ref[...].astype(mxu_dtype), h2.astype(mxu_dtype),
                preferred_element_type=jnp.float32)
        + b3_ref[...]
    )

    # ---- Layer 4 on VPU + XLU: [50,1]*[50,BT] -> cross-sublane reduce.
    out = jnp.sum(w4t_ref[...] * h3, axis=0, keepdims=True) + b4_ref[...]
    o_ref[...] = out.astype(o_ref.dtype)


def init_params(key):
    """PyTorch-style init U(-1/sqrt(fan_in), 1/sqrt(fan_in)).

    Weights stored [out_features, in_features] (same as nn.Linear.weight),
    biases stored [out_features, 1] for lane-broadcast inside the kernel.
    """
    dims = [(4, 50), (50, 50), (50, 50), (50, 1)]
    params = []
    for fan_in, fan_out in dims:
        kw, kb, key = jax.random.split(key, 3)
        bound = 1.0 / jnp.sqrt(jnp.float32(fan_in))
        w = jax.random.uniform(kw, (fan_out, fan_in), jnp.float32, -bound, bound)
        b = jax.random.uniform(kb, (fan_out, 1), jnp.float32, -bound, bound)
        params.append((w, b))
    return params


def _choose_b_tile(batch, requested):
    """Pick a 128-multiple batch tile; prefer >=2 grid steps (v7x megacore)."""
    b_pad_min = max(128, pl.cdiv(batch, 128) * 128)
    bt = min(requested, b_pad_min)
    if b_pad_min >= 256:
        # Cap at ~half the padded batch so both v7x TensorCores get work.
        half = max(128, pl.cdiv(b_pad_min, 2 * 128) * 128)
        bt = min(bt, half)
    bt = max(128, (bt // 128) * 128)
    return bt


def travel_time_nn(x_r, x_s, params, *, b_tile=8192, use_bf16=False):
    """Forward pass matching TravelTimeNN.forward(x_r, x_s)."""
    assert x_r.shape == x_s.shape and x_r.shape[1] == 2
    B = x_r.shape[0]

    b_tile = _choose_b_tile(B, b_tile)
    num_tiles = pl.cdiv(B, b_tile)
    b_pad = num_tiles * b_tile

    # Layout plumbing (wrapper-side): batch onto lanes.
    xr_t = x_r.astype(jnp.float32).T  # [2, B]
    xs_t = x_s.astype(jnp.float32).T  # [2, B]
    if b_pad != B:
        pad = b_pad - B
        xr_t = jnp.pad(xr_t, ((0, 0), (0, pad)))
        xs_t = jnp.pad(xs_t, ((0, 0), (0, pad)))

    (w1, b1), (w2, b2), (w3, b3), (w4, b4) = params
    w1r, w1s = w1[:, :2], w1[:, 2:]   # split so no concat of x is needed
    w4t = w4.T                        # [50, 1] for the VPU/XLU final layer

    def const_spec(arr):
        # Full-array block, constant index map -> parameter stays VMEM-resident.
        return pl.BlockSpec(arr.shape, lambda i: (0, 0))

    in_specs = [
        pl.BlockSpec((2, b_tile), lambda i: (0, i)),   # x_r^T tile
        pl.BlockSpec((2, b_tile), lambda i: (0, i)),   # x_s^T tile
        const_spec(w1r), const_spec(w1s), const_spec(b1),
        const_spec(w2), const_spec(b2),
        const_spec(w3), const_spec(b3),
        const_spec(w4t), const_spec(b4),
    ]
    out_spec = pl.BlockSpec((1, b_tile), lambda i: (0, i))

    # Advisory cost for XLA's scheduler.
    param_bytes = 4 * (50 * 4 + 50 + 50 * 50 + 50 + 50 * 50 + 50 + 50 + 1)
    cost = pl.CostEstimate(
        flops=2 * b_pad * (50 * 4 + 50 * 50 + 50 * 50 + 50),
        transcendentals=150 * b_pad,
        bytes_accessed=20 * b_pad + param_bytes,
    )

    mxu_dtype = jnp.bfloat16 if use_bf16 else jnp.float32
    kernel = functools.partial(travel_time_mlp_kernel, mxu_dtype=mxu_dtype)

    out_t = pl.pallas_call(
        kernel,
        out_shape=jax.ShapeDtypeStruct((1, b_pad), jnp.float32),
        grid=(num_tiles,),
        in_specs=in_specs,
        out_specs=out_spec,
        compiler_params=pltpu.CompilerParams(
            dimension_semantics=("parallel",),
            vmem_limit_bytes=32 * 1024 * 1024,
        ),
        cost_estimate=cost,
    )(xr_t, xs_t, w1r, w1s, b1, w2, b2, w3, b3, w4t, b4)

    # Back to the PyTorch layout [B, 1]; drop batch padding.
    return out_t[:, :B].T


def travel_time_nn_ref(x_r, x_s, params):
    """Pure-JAX reference (PyTorch semantics: x @ W.T + b)."""
    x = jnp.concatenate([x_r, x_s], axis=1).astype(jnp.float32)  # [B, 4]
    (w1, b1), (w2, b2), (w3, b3), (w4, b4) = params
    h = jnp.tanh(x @ w1.T + b1.T)
    h = jnp.tanh(h @ w2.T + b2.T)
    h = jnp.tanh(h @ w3.T + b3.T)
    return h @ w4.T + b4.T


if __name__ == "__main__":
    key = jax.random.PRNGKey(0)
    k_params, k_r, k_s, k_r2, k_s2, k_r3, k_s3 = jax.random.split(key, 7)

    params = init_params(k_params)

    # Small case (single grid step, batch padded 8 -> 128), f32 path.
    B = 8
    x_r = jax.random.normal(k_r, (B, 2), jnp.float32)   # receiver coords
    x_s = jax.random.normal(k_s, (B, 2), jnp.float32)   # source coords

    out = jax.block_until_ready(travel_time_nn(x_r, x_s, params))
    ref = travel_time_nn_ref(x_r, x_s, params)
    assert out.shape == (B, 1), out.shape
    assert jnp.allclose(out, ref, atol=1e-5, rtol=1e-5), (
        f"mismatch (B={B}): max abs err = {jnp.max(jnp.abs(out - ref))}"
    )

    # Ragged case exercising multiple grid steps + final-tile padding, f32 path.
    B2 = 300
    x_r2 = jax.random.normal(k_r2, (B2, 2), jnp.float32)
    x_s2 = jax.random.normal(k_s2, (B2, 2), jnp.float32)

    out2 = jax.block_until_ready(travel_time_nn(x_r2, x_s2, params, b_tile=128))
    ref2 = travel_time_nn_ref(x_r2, x_s2, params)
    assert out2.shape == (B2, 1), out2.shape
    assert jnp.allclose(out2, ref2, atol=1e-5, rtol=1e-5), (
        f"mismatch (B={B2}): max abs err = {jnp.max(jnp.abs(out2 - ref2))}"
    )

    # bf16 MXU-operand path (v6e/v7x speed path): exercised for lowering;
    # reduced precision, so only sanity-check shape/finiteness here.
    B3 = 256
    x_r3 = jax.random.normal(k_r3, (B3, 2), jnp.float32)
    x_s3 = jax.random.normal(k_s3, (B3, 2), jnp.float32)
    out3 = jax.block_until_ready(
        travel_time_nn(x_r3, x_s3, params, use_bf16=True)
    )
    assert out3.shape == (B3, 1), out3.shape
    assert bool(jnp.all(jnp.isfinite(out3))), "bf16 path produced non-finite values"

    print("KERNEL_OK")
</pallas_src>

<mosaic_0001>
module attributes {stable_mosaic.version = 11 : i64} {
  func.func @travel_time_mlp_kernel(%arg0: i32, %arg1: memref<2x128xf32, #tpu.memory_space<vmem>>, %arg2: memref<2x128xf32, #tpu.memory_space<vmem>>, %arg3: memref<50x2xf32, #tpu.memory_space<vmem>>, %arg4: memref<50x2xf32, #tpu.memory_space<vmem>>, %arg5: memref<50x1xf32, #tpu.memory_space<vmem>>, %arg6: memref<50x50xf32, #tpu.memory_space<vmem>>, %arg7: memref<50x1xf32, #tpu.memory_space<vmem>>, %arg8: memref<50x50xf32, #tpu.memory_space<vmem>>, %arg9: memref<50x1xf32, #tpu.memory_space<vmem>>, %arg10: memref<50x1xf32, #tpu.memory_space<vmem>>, %arg11: memref<1x1xf32, #tpu.memory_space<vmem>>, %arg12: memref<1x128xf32, #tpu.memory_space<vmem>>) attributes {dimension_semantics = [#tpu.dimension_semantics<parallel>], iteration_bounds = array<i64: 1>, scalar_prefetch = 0 : i64, scratch_operands = 0 : i64, tpu.core_type = #tpu.core_type<tc>, window_params = [{transform_indices = @transform_0, window_bounds = array<i64: 2, 128>}, {transform_indices = @transform_1, window_bounds = array<i64: 2, 128>}, {pipeline_mode = #tpu.pipeline_mode<synchronous>, transform_indices = @transform_2, window_bounds = array<i64: 50, 2>}, {pipeline_mode = #tpu.pipeline_mode<synchronous>, transform_indices = @transform_3, window_bounds = array<i64: 50, 2>}, {pipeline_mode = #tpu.pipeline_mode<synchronous>, transform_indices = @transform_4, window_bounds = array<i64: 50, 1>}, {pipeline_mode = #tpu.pipeline_mode<synchronous>, transform_indices = @transform_5, window_bounds = array<i64: 50, 50>}, {pipeline_mode = #tpu.pipeline_mode<synchronous>, transform_indices = @transform_6, window_bounds = array<i64: 50, 1>}, {pipeline_mode = #tpu.pipeline_mode<synchronous>, transform_indices = @transform_7, window_bounds = array<i64: 50, 50>}, {pipeline_mode = #tpu.pipeline_mode<synchronous>, transform_indices = @transform_8, window_bounds = array<i64: 50, 1>}, {pipeline_mode = #tpu.pipeline_mode<synchronous>, transform_indices = @transform_9, window_bounds = array<i64: 50, 1>}, {pipeline_mode = #tpu.pipeline_mode<synchronous>, transform_indices = @transform_10, window_bounds = array<i64: 1, 1>}, {transform_indices = @transform_11, window_bounds = array<i64: 1, 128>}]} {
    %c0 = arith.constant 0 : index
    %c0_0 = arith.constant 0 : index
    %0 = vector.load %arg1[%c0, %c0_0] : memref<2x128xf32, #tpu.memory_space<vmem>>, vector<2x128xf32>
    %c0_1 = arith.constant 0 : index
    %c0_2 = arith.constant 0 : index
    %1 = vector.load %arg2[%c0_1, %c0_2] : memref<2x128xf32, #tpu.memory_space<vmem>>, vector<2x128xf32>
    %c0_3 = arith.constant 0 : index
    %c0_4 = arith.constant 0 : index
    %2 = vector.load %arg3[%c0_3, %c0_4] : memref<50x2xf32, #tpu.memory_space<vmem>>, vector<50x2xf32>
    %c0_5 = arith.constant 0 : index
    %c0_6 = arith.constant 0 : index
    %3 = vector.load %arg4[%c0_5, %c0_6] : memref<50x2xf32, #tpu.memory_space<vmem>>, vector<50x2xf32>
    %4 = vector.extract_strided_slice %2 {offsets = [0, 0], sizes = [50, 1], strides = [1, 1]} : vector<50x2xf32> to vector<50x1xf32>
    %5 = vector.extract_strided_slice %0 {offsets = [0, 0], sizes = [1, 128], strides = [1, 1]} : vector<2x128xf32> to vector<1x128xf32>
    %6 = vector.broadcast %4 : vector<50x1xf32> to vector<50x128xf32>
    %7 = vector.broadcast %5 : vector<1x128xf32> to vector<50x128xf32>
    %8 = arith.mulf %6, %7 : vector<50x128xf32>
    %9 = vector.extract_strided_slice %2 {offsets = [0, 1], sizes = [50, 1], strides = [1, 1]} : vector<50x2xf32> to vector<50x1xf32>
    %10 = vector.extract_strided_slice %0 {offsets = [1, 0], sizes = [1, 128], strides = [1, 1]} : vector<2x128xf32> to vector<1x128xf32>
    %11 = vector.broadcast %9 : vector<50x1xf32> to vector<50x128xf32>
    %12 = vector.broadcast %10 : vector<1x128xf32> to vector<50x128xf32>
    %13 = arith.mulf %11, %12 : vector<50x128xf32>
    %14 = arith.addf %8, %13 : vector<50x128xf32>
    %15 = vector.extract_strided_slice %3 {offsets = [0, 0], sizes = [50, 1], strides = [1, 1]} : vector<50x2xf32> to vector<50x1xf32>
    %16 = vector.extract_strided_slice %1 {offsets = [0, 0], sizes = [1, 128], strides = [1, 1]} : vector<2x128xf32> to vector<1x128xf32>
    %17 = vector.broadcast %15 : vector<50x1xf32> to vector<50x128xf32>
    %18 = vector.broadcast %16 : vector<1x128xf32> to vector<50x128xf32>
    %19 = arith.mulf %17, %18 : vector<50x128xf32>
    %20 = arith.addf %14, %19 : vector<50x128xf32>
    %21 = vector.extract_strided_slice %3 {offsets = [0, 1], sizes = [50, 1], strides = [1, 1]} : vector<50x2xf32> to vector<50x1xf32>
    %22 = vector.extract_strided_slice %1 {offsets = [1, 0], sizes = [1, 128], strides = [1, 1]} : vector<2x128xf32> to vector<1x128xf32>
    %23 = vector.broadcast %21 : vector<50x1xf32> to vector<50x128xf32>
    %24 = vector.broadcast %22 : vector<1x128xf32> to vector<50x128xf32>
    %25 = arith.mulf %23, %24 : vector<50x128xf32>
    %26 = arith.addf %20, %25 : vector<50x128xf32>
    %c0_7 = arith.constant 0 : index
    %c0_8 = arith.constant 0 : index
    %27 = vector.load %arg5[%c0_7, %c0_8] : memref<50x1xf32, #tpu.memory_space<vmem>>, vector<50x1xf32>
    %28 = vector.broadcast %27 : vector<50x1xf32> to vector<50x128xf32>
    %29 = arith.addf %26, %28 : vector<50x128xf32>
    %30 = math.tanh %29 : vector<50x128xf32>
    %c0_9 = arith.constant 0 : index
    %c0_10 = arith.constant 0 : index
    %31 = vector.load %arg6[%c0_9, %c0_10] : memref<50x50xf32, #tpu.memory_space<vmem>>, vector<50x50xf32>
    %cst = arith.constant dense<0.000000e+00> : vector<50x128xf32>
    %32 = tpu.matmul %31, %30, %cst {dimension_numbers = #tpu.dot_dimension_numbers<[1], [0], [0], [1], [0, 0, 1, 1], [], []>} : vector<50x50xf32>, vector<50x128xf32>, vector<50x128xf32> -> vector<50x128xf32>
    %c0_11 = arith.constant 0 : index
    %c0_12 = arith.constant 0 : index
    %33 = vector.load %arg7[%c0_11, %c0_12] : memref<50x1xf32, #tpu.memory_space<vmem>>, vector<50x1xf32>
    %34 = vector.broadcast %33 : vector<50x1xf32> to vector<50x128xf32>
    %35 = arith.addf %32, %34 : vector<50x128xf32>
    %36 = math.tanh %35 : vector<50x128xf32>
    %c0_13 = arith.constant 0 : index
    %c0_14 = arith.constant 0 : index
    %37 = vector.load %arg8[%c0_13, %c0_14] : memref<50x50xf32, #tpu.memory_space<vmem>>, vector<50x50xf32>
    %cst_15 = arith.constant dense<0.000000e+00> : vector<50x128xf32>
    %38 = tpu.matmul %37, %36, %cst_15 {dimension_numbers = #tpu.dot_dimension_numbers<[1], [0], [0], [1], [0, 0, 1, 1], [], []>} : vector<50x50xf32>, vector<50x128xf32>, vector<50x128xf32> -> vector<50x128xf32>
    %c0_16 = arith.constant 0 : index
    %c0_17 = arith.constant 0 : index
    %39 = vector.load %arg9[%c0_16, %c0_17] : memref<50x1xf32, #tpu.memory_space<vmem>>, vector<50x1xf32>
    %40 = vector.broadcast %39 : vector<50x1xf32> to vector<50x128xf32>
    %41 = arith.addf %38, %40 : vector<50x128xf32>
    %42 = math.tanh %41 : vector<50x128xf32>
    %c0_18 = arith.constant 0 : index
    %c0_19 = arith.constant 0 : index
    %43 = vector.load %arg10[%c0_18, %c0_19] : memref<50x1xf32, #tpu.memory_space<vmem>>, vector<50x1xf32>
    %44 = vector.broadcast %43 : vector<50x1xf32> to vector<50x128xf32>
    %45 = arith.mulf %44, %42 : vector<50x128xf32>
    %cst_20 = arith.constant dense<0.000000e+00> : vector<128xf32>
    %46 = vector.multi_reduction <add>, %45, %cst_20 [0] : vector<50x128xf32> to vector<128xf32>
    %47 = vector.shape_cast %46 : vector<128xf32> to vector<1x128xf32>
    %c0_21 = arith.constant 0 : index
    %c0_22 = arith.constant 0 : index
    %48 = vector.load %arg11[%c0_21, %c0_22] : memref<1x1xf32, #tpu.memory_space<vmem>>, vector<1x1xf32>
    %49 = vector.broadcast %48 : vector<1x1xf32> to vector<1x128xf32>
    %50 = arith.addf %47, %49 : vector<1x128xf32>
    %c0_23 = arith.constant 0 : index
    %c0_24 = arith.constant 0 : index
    %51 = vector.load %arg12[%c0_23, %c0_24] : memref<1x128xf32, #tpu.memory_space<vmem>>, vector<1x128xf32>
    tpu.vector_store %arg12[%c0_23, %c0_24], %50 {strides = array<i32>} : memref<1x128xf32, #tpu.memory_space<vmem>>, vector<1x128xf32>,
    return
  }
  func.func @transform_0(%arg0: i32) -> (i32, i32) {
    %c0_i32 = arith.constant 0 : i32
    %c0_i32_0 = arith.constant 0 : i32
    return %c0_i32, %arg0 : i32, i32
  }
  func.func @transform_1(%arg0: i32) -> (i32, i32) {
    %c0_i32 = arith.constant 0 : i32
    %c0_i32_0 = arith.constant 0 : i32
    return %c0_i32, %arg0 : i32, i32
  }
  func.func @transform_2(%arg0: i32) -> (i32, i32) {
    %c0_i32 = arith.constant 0 : i32
    %c0_i32_0 = arith.constant 0 : i32
    %c0_i32_1 = arith.constant 0 : i32
    return %c0_i32, %c0_i32_0 : i32, i32
  }
  func.func @transform_3(%arg0: i32) -> (i32, i32) {
    %c0_i32 = arith.constant 0 : i32
    %c0_i32_0 = arith.constant 0 : i32
    %c0_i32_1 = arith.constant 0 : i32
    return %c0_i32, %c0_i32_0 : i32, i32
  }
  func.func @transform_4(%arg0: i32) -> (i32, i32) {
    %c0_i32 = arith.constant 0 : i32
    %c0_i32_0 = arith.constant 0 : i32
    %c0_i32_1 = arith.constant 0 : i32
    return %c0_i32, %c0_i32_0 : i32, i32
  }
  func.func @transform_5(%arg0: i32) -> (i32, i32) {
    %c0_i32 = arith.constant 0 : i32
    %c0_i32_0 = arith.constant 0 : i32
    %c0_i32_1 = arith.constant 0 : i32
    return %c0_i32, %c0_i32_0 : i32, i32
  }
  func.func @transform_6(%arg0: i32) -> (i32, i32) {
    %c0_i32 = arith.constant 0 : i32
    %c0_i32_0 = arith.constant 0 : i32
    %c0_i32_1 = arith.constant 0 : i32
    return %c0_i32, %c0_i32_0 : i32, i32
  }
  func.func @transform_7(%arg0: i32) -> (i32, i32) {
    %c0_i32 = arith.constant 0 : i32
    %c0_i32_0 = arith.constant 0 : i32
    %c0_i32_1 = arith.constant 0 : i32
    return %c0_i32, %c0_i32_0 : i32, i32
  }
  func.func @transform_8(%arg0: i32) -> (i32, i32) {
    %c0_i32 = arith.constant 0 : i32
    %c0_i32_0 = arith.constant 0 : i32
    %c0_i32_1 = arith.constant 0 : i32
    return %c0_i32, %c0_i32_0 : i32, i32
  }
  func.func @transform_9(%arg0: i32) -> (i32, i32) {
    %c0_i32 = arith.constant 0 : i32
    %c0_i32_0 = arith.constant 0 : i32
    %c0_i32_1 = arith.constant 0 : i32
    return %c0_i32, %c0_i32_0 : i32, i32
  }
  func.func @transform_10(%arg0: i32) -> (i32, i32) {
    %c0_i32 = arith.constant 0 : i32
    %c0_i32_0 = arith.constant 0 : i32
    %c0_i32_1 = arith.constant 0 : i32
    return %c0_i32, %c0_i32_0 : i32, i32
  }
  func.func @transform_11(%arg0: i32) -> (i32, i32) {
    %c0_i32 = arith.constant 0 : i32
    %c0_i32_0 = arith.constant 0 : i32
    return %c0_i32, %arg0 : i32, i32
  }
}

</mosaic_0001>

<bundles_post_ra>
// kernel: tpu_custom_call.1
= control target key start
LH: loop header
LB: loop body
LE: loop exit
PB: predicated region body
PF: predicated region fallthrough
CT: control target
= control target key end

     0   :  { %s1071_s0 = inlined_call_operand.vmem [shape: f32[2,128], index: 0, kind: input, shape index: {}]   ;;  %s1072_s1 = inlined_call_operand.vmem [shape: f32[2,128], index: 1, kind: input, shape index: {}]   ;;  %s1073_s2 = inlined_call_operand.vmem [shape: f32[50,2], index: 2, kind: input, shape index: {}]   ;;  %s1074_s3 = inlined_call_operand.vmem [shape: f32[50,2], index: 3, kind: input, shape index: {}]   ;;  %s1075_s4 = inlined_call_operand.vmem [shape: f32[50,1], index: 4, kind: input, shape index: {}]   ;;  %s1076_s5 = inlined_call_operand.vmem [shape: f32[50,50], index: 5, kind: input, shape index: {}]   ;;  %s1077_s6 = inlined_call_operand.vmem [shape: f32[50,1], index: 6, kind: input, shape index: {}]   ;;  %s1078_s7 = inlined_call_operand.vmem [shape: f32[50,50], index: 7, kind: input, shape index: {}]   ;;  %s1079_s8 = inlined_call_operand.vmem [shape: f32[50,1], index: 8, kind: input, shape index: {}]   ;;  %s1080_s9 = inlined_call_operand.vmem [shape: f32[50,1], index: 9, kind: input, shape index: {}]   ;;  %s1081_s10 = inlined_call_operand.<no memory space> [shape: f32[1,1], index: 10, kind: input, shape index: {}]   ;;  %s1082_s11 = inlined_call_operand.hbm [shape: f32[1,128], index: 11, kind: output, shape index: {}]  }
   0x1   :  { %v16_v0 = vstv %s1081_s10 }
   0x2   :  { %17 = vst [vmem:[#allocation2] sm:$0x1] %v16_v0 }
   0x3   :  { %v56_v1 = vld [vmem:[%s1074_s3 + $0x30] sm:$0x3]  ;;  %v732_v3 = vmov 1   ;;  %v733_v4 = vmov 0   ;;  %v48_v5 = vld [vmem:[%s1073_s2 + $0x28] sm:$0xff] }
   0x4   :  { %v49_v2 = vld [vmem:[%s1073_s2 + $0x30] sm:$0x3]  ;;  %650 = vset.pattern.permute.xlu0 %v732_v3  ;;  %653 = vset.pattern.permute.xlu2 %v733_v4 }
   0x5   :  { %651 = vset.pattern.permute.xlu1 %v733_v4  ;;  %175 = vperm.xlu2 %653, %v56_v1  }
   0x6   :  { %125 = vperm.xlu0 %650, %v49_v2   ;;  %84 = vperm.xlu1 %651, %v48_v5  }
   0x7   :  { %18 = vsyncpa [#allocation4], 0  ;;  %v47_v6 = vld [vmem:[%s1073_s2 + $0x20] sm:$0xff]  ;;  %v55_v7 = vld [vmem:[%s1074_s3 + $0x28] sm:$0xff]  ;;  %vm363_vm0 = vcmask 1041408   ;;  %vm341_vm1 = vcmask 408576  }
   0x8   :  { %v54_v8 = vld [vmem:[%s1074_s3 + $0x20] sm:$0xff]  ;;  %v53_v9 = vld [vmem:[%s1074_s3 + $0x18] sm:$0xff]  ;;  %v45_v12 = vld [vmem:[%s1073_s2 + $0x10] sm:$0xff] }
   0x9   :  { %v46_v10 = vld [vmem:[%s1073_s2 + $0x18] sm:$0xff]  ;;  %v43_v11 = vld [vmem:[%s1073_s2] sm:$0xff]  ;;  %v44_v13 = vld [vmem:[%s1073_s2 + $0x8] sm:$0xff] }
   0xa   :  { %v242_v14 = vld [vmem:[%s1075_s4 + $0x30] sm:$0x3]  ;;  %v240_v15 = vld [vmem:[%s1075_s4 + $0x20] sm:$0xff]  ;;  %v241_v18 = vld [vmem:[%s1075_s4 + $0x28] sm:$0xff] }
   0xb   :  { %v52_v16 = vld [vmem:[%s1074_s3 + $0x10] sm:$0xff]  ;;  %v51_v20 = vld [vmem:[%s1074_s3 + $0x8] sm:$0xff]  ;;  %v302_v21 = vld [vmem:[%s1077_s6 + $0x18] sm:$0xff] }
   0xc   :  { %v238_v17 = vld [vmem:[%s1075_s4 + $0x10] sm:$0xff]  ;;  %v50_v22 = vld [vmem:[%s1074_s3] sm:$0xff]  ;;  %v239_v24 = vld [vmem:[%s1075_s4 + $0x18] sm:$0xff] }
   0xd   :  { %79 = vperm.xlu2 %653, %v47_v6   ;;  %v305_v19 = vld [vmem:[%s1077_s6 + $0x30] sm:$0x3]  ;;  %v299_v23 = vld [vmem:[%s1077_s6] sm:$0xff]  ;;  %v237_v28 = vld [vmem:[%s1075_s4 + $0x8] sm:$0xff] }
   0xe   :  { %218 = vperm.xlu0 %650, %v56_v1   ;;  %652 = vset.pattern.permute.xlu1 %v732_v3  ;;  %v421_v25 = vld [vmem:[%s1079_s8 + $0x10] sm:$0xff]  ;;  %v236_v27 = vld [vmem:[%s1075_s4] sm:$0xff]  ;;  %v424_v29 = vld [vmem:[%s1079_s8 + $0x28] sm:$0xff] }
   0xf   :  { %121 = vperm.xlu1 %652, %v48_v5   ;;  %v303_v30 = vld [vmem:[%s1077_s6 + $0x20] sm:$0xff]  ;;  %v304_v32 = vld [vmem:[%s1077_s6 + $0x28] sm:$0xff]  ;;  %v301_v37 = vld [vmem:[%s1077_s6 + $0x10] sm:$0xff] }
  0x10   :  { %v531_v33 = vld [vmem:[%s1080_s9 + $0x8] sm:$0xff]  ;;  %v534_v39 = vld [vmem:[%s1080_s9 + $0x20] sm:$0xff]  ;;  %v422_v49 = vld [vmem:[%s1079_s8 + $0x18] sm:$0xff] }
  0x11   :  { %v300_v34 = vld [vmem:[%s1077_s6 + $0x8] sm:$0xff]  ;;  %v419_v43 = vld [vmem:[%s1079_s8] sm:$0xff]  ;;  %v425_v53 = vld [vmem:[%s1079_s8 + $0x30] sm:$0x3] }
  0x12   :  { %v420_v40 = vld [vmem:[%s1079_s8 + $0x8] sm:$0xff]  ;;  %v592_v45 = vld [vmem:[#allocation2] sm:$0x1]  ;;  %v533_v55 = vld [vmem:[%s1080_s9 + $0x18] sm:$0xff] }
  0x13   :  { %v423_v46 = vld [vmem:[%s1079_s8 + $0x20] sm:$0xff]  ;;  %v532_v58 = vld [vmem:[%s1080_s9 + $0x10] sm:$0xff] }
  0x14   :  { %v530_v51 = vld [vmem:[%s1080_s9] sm:$0xff]  ;;  %v536_v62 = vld [vmem:[%s1080_s9 + $0x30] sm:$0x3] }
  0x15   :  { %170 = vperm.xlu2 %653, %v55_v7   ;;  %v41_v60 = vld [vmem:[%s1071_s0] sm:$0x3] }
  0x16   :  { %210 = vperm.xlu0 %650, %v54_v8   ;;  %v42_v61 = vld [vmem:[%s1072_s1] sm:$0x3]  ;;  %v955_v63 = vperm.slane %v41_v60, 0  ;;  %v957_v0 = vperm.slane %v41_v60, 1 }
  0x17   :  { %117 = vperm.xlu1 %652, %v47_v6   ;;  %v959_v1 = vperm.slane %v42_v61, 0 }
  0x1d   :  { %655 = vset.pattern.permute.xlu2 %v732_v3 }
  0x1e   :  { %206 = vperm.xlu0 %650, %v53_v9   ;;  %113 = vperm.xlu2 %655, %v46_v10  }
  0x1f   :  { %654 = vset.pattern.permute.xlu1 %v733_v4 }
  0x20   :  { %74 = vperm.xlu1 %654, %v46_v10   ;;  %v970_v10 = vperm.slane %v42_v61, 1 }
  0x26   :  { %101 = vperm.xlu0 %650, %v43_v11   ;;  %657 = vset.pattern.permute.xlu2 %v733_v4 }
  0x27   :  { %69 = vperm.xlu2 %657, %v45_v12  }
  0x28   :  { %656 = vset.pattern.permute.xlu1 %v732_v3 }
  0x29   :  { %214 = vperm.xlu1 %656, %v55_v7  }
  0x2e   :  { %661 = vset.pattern.permute.xlu0 %v733_v4 }
  0x2f   :  { %89 = vperm.xlu0 %661, %v49_v2   ;;  %160 = vperm.xlu2 %657, %v53_v9  }
  0x31   :  { %109 = vperm.xlu1 %656, %v45_v12  }
  0x37   :  { %165 = vperm.xlu0 %661, %v54_v8   ;;  %64 = vperm.xlu2 %657, %v44_v13  }
  0x39   :  { %658 = vset.pattern.permute.xlu1 %v733_v4 }
  0x3a   :  { %275 = vperm.xlu1 %658, %v242_v14  }
  0x3f   :  { %265 = vperm.xlu0 %661, %v240_v15   ;;  %155 = vperm.xlu2 %657, %v52_v16  }
  0x42   :  { %659 = vset.pattern.permute.xlu1 %v732_v3 }
  0x43   :  { %105 = vperm.xlu1 %659, %v44_v13  }
  0x47   :  { %255 = vperm.xlu0 %661, %v238_v17   ;;  %59 = vperm.xlu2 %657, %v43_v11  }
  0x4b   :  { %660 = vset.pattern.permute.xlu1 %v733_v4 }
  0x4c   :  { %270 = vperm.xlu1 %660, %v241_v18  }
  0x4f   :  { %338 = vperm.xlu0 %661, %v305_v19   ;;  %662 = vset.pattern.permute.xlu2 %v732_v3  ;;  %v535_v3 = vld [vmem:[%s1080_s9 + $0x28] sm:$0xff]  ;;  %s608_s9 = sshll.u32 %s1082_s11, 4  ;;  %s609_s9 = int_to_ptr.hbm [resolvable:$true] %s608_s9 }
  0x50   :  { %202 = vperm.xlu2 %662, %v52_v16  }
  0x54   :  { %150 = vperm.xlu1 %660, %v51_v20  }
  0x57   :  { %323 = vperm.xlu0 %661, %v302_v21  }
  0x58   :  { %198 = vperm.xlu2 %662, %v51_v20  }
  0x5c   :  { %145 = vperm.xlu1 %660, %v50_v22  }
  0x5f   :  { %308 = vperm.xlu0 %661, %v299_v23   ;;  %v874_v26 = vpop.permute.xlu2 %175 }
  0x60   :  { %194 = vperm.xlu2 %662, %v50_v22   ;;  %v185_v9 = vmul.f32 %v959_v1, %v874_v26 }
  0x64   :  { %260 = vperm.xlu1 %660, %v239_v24  }
  0x67   :  { %438 = vperm.xlu0 %661, %v421_v25   ;;  %v889_v31 = vpop.permute.xlu2 %79 }
  0x68   :  { %663 = vset.pattern.permute.xlu2 %v733_v4  ;;  %v97_v21 = vmul.f32 %v955_v63, %v889_v31 }
  0x69   :  { %245 = vperm.xlu2 %663, %v236_v27  }
  0x6c   :  { %250 = vperm.xlu1 %660, %v237_v28  }
  0x6f   :  { %453 = vperm.xlu0 %661, %v424_v29   ;;  %v905_v38 = vpop.permute.xlu2 %170 }
  0x70   :  { %v184_v28 = vmul.f32 %v959_v1, %v905_v38 }
  0x71   :  { %328 = vperm.xlu2 %663, %v303_v30  }
  0x74   :  { %333 = vperm.xlu1 %660, %v304_v32  }
  0x77   :  { %544 = vperm.xlu0 %661, %v531_v33  }
  0x78   :  { %v900_v35 = vpop.permute.xlu1 %84  ;;  %v126_v36 = vpop.permute.xlu0 %125 }
  0x79   :  { %313 = vperm.xlu2 %663, %v300_v34   ;;  %v916_v44 = vpop.permute.xlu2 %113  ;;  %v135_v4 = vmul.f32 %v957_v0, %v126_v36  ;;  %v98_v22 = vmul.f32 %v955_v63, %v900_v35 }
  0x7c   :  { %318 = vperm.xlu1 %660, %v301_v37  }
  0x7f   :  { %559 = vperm.xlu0 %661, %v534_v39  }
  0x80   :  { %v219_v41 = vpop.permute.xlu0 %218 }
  0x81   :  { %v122_v42 = vpop.permute.xlu1 %121  ;;  %433 = vperm.xlu2 %663, %v420_v40   ;;  %v924_v50 = vpop.permute.xlu2 %69  ;;  %v228_v12 = vmul.f32 %v970_v10, %v219_v41 }
  0x82   :  { %v134_v18 = vmul.f32 %v957_v0, %v122_v42 }
  0x84   :  { %428 = vperm.xlu1 %660, %v419_v43   ;;  %v141_v26 = vadd.f32 %v134_v18, %v98_v22  ;;  %v132_v43 = vmul.f32 %v957_v0, %v916_v44  ;;  %v295_v22 = vld [vmem:[%s1076_s5 + $0x18] sm:$0xff] }
  0x86   :  { %v191_v32 = vadd.f32 %v184_v28, %v141_v26  ;;  %v294_v26 = vld [vmem:[%s1076_s5 + $0x10] sm:$0xff] }
  0x87   :  { %595 = vperm.xlu0 %661, %v592_v45   ;;  %v298_v28 = vld [vmem:[%s1076_s5 + $0x30] sm:$0x3] }
  0x88   :  { %v211_v47 = vpop.permute.xlu0 %210 }
  0x89   :  { %v118_v48 = vpop.permute.xlu1 %117  ;;  %448 = vperm.xlu2 %663, %v423_v46   ;;  %v939_v56 = vpop.permute.xlu2 %160  ;;  %v226_v31 = vmul.f32 %v970_v10, %v211_v47 }
  0x8a   :  { %v133_v19 = vmul.f32 %v957_v0, %v118_v48  ;;  %v95_v48 = vmul.f32 %v955_v63, %v924_v50 }
  0x8c   :  { %443 = vperm.xlu1 %660, %v422_v49   ;;  %v140_v27 = vadd.f32 %v133_v19, %v97_v21  ;;  %v182_v49 = vmul.f32 %v959_v1, %v939_v56 }
  0x90   :  { %v929_v52 = vpop.permute.xlu0 %206 }
  0x91   :  { %539 = vperm.xlu2 %663, %v530_v51   ;;  %v965_v5 = vpop.permute.xlu2 %64  ;;  %v225_v44 = vmul.f32 %v970_v10, %v929_v52 }
  0x92   :  { %v934_v54 = vpop.permute.xlu1 %74 }
  0x93   :  { %v96_v45 = vmul.f32 %v955_v63, %v934_v54 }
  0x94   :  { %458 = vperm.xlu1 %660, %v425_v53  }
  0x95   :  { %v139_v51 = vadd.f32 %v132_v43, %v96_v45 }
  0x97   :  { %v189_v60 = vadd.f32 %v182_v49, %v139_v51 }
  0x98   :  { %v941_v57 = vpop.permute.xlu0 %101 }
  0x99   :  { %554 = vperm.xlu2 %663, %v533_v55   ;;  %v156_v14 = vpop.permute.xlu2 %155  ;;  %v129_v61 = vmul.f32 %v957_v0, %v941_v57 }
  0x9b   :  { %v215_v59 = vpop.permute.xlu1 %214 }
  0x9c   :  { %549 = vperm.xlu1 %660, %v532_v58   ;;  %v227_v29 = vmul.f32 %v970_v10, %v215_v59  ;;  %v181_v58 = vmul.f32 %v959_v1, %v156_v14 }
  0x9e   :  { %v234_v35 = vadd.f32 %v227_v29, %v191_v32 }
  0xa1   :  { %v90_v2 = vpop.permute.xlu0 %89  ;;  %569 = vperm.xlu2 %663, %v536_v62   ;;  %v60_v25 = vpop.permute.xlu2 %59 }
  0xa2   :  { %v99_v6 = vmul.f32 %v955_v63, %v90_v2  ;;  %v93_v54 = vmul.f32 %v955_v63, %v60_v25  ;;  %v94_v2 = vmul.f32 %v955_v63, %v965_v5  ;;  %v296_v25 = vld [vmem:[%s1076_s5 + $0x20] sm:$0xff] }
  0xa3   :  { %v110_v7 = vpop.permute.xlu1 %109 }
  0xa4   :  { %v142_v8 = vadd.f32 %v135_v4, %v99_v6  ;;  %564 = vperm.xlu1 %660, %v535_v3   ;;  %v131_v47 = vmul.f32 %v957_v0, %v110_v7  ;;  %v136_v4 = vadd.f32 %v129_v61, %v93_v54  ;;  %v416_v61 = vld [vmem:[%s1078_s7 + $0x20] sm:$0xff] }
  0xa6   :  { %v192_v11 = vadd.f32 %v185_v9, %v142_v8  ;;  %v138_v55 = vadd.f32 %v131_v47, %v95_v48  ;;  %v232_v8 = vadd.f32 %v225_v44, %v189_v60  ;;  %v412_v60 = vld [vmem:[%s1078_s7] sm:$0xff] }
  0xa8   :  { %v235_v13 = vadd.f32 %v228_v12, %v192_v11  ;;  %v188_v62 = vadd.f32 %v181_v58, %v138_v55 }
  0xa9   :  { %v166_v17 = vpop.permute.xlu0 %165 }
  0xaa   :  { %v183_v23 = vmul.f32 %v959_v1, %v166_v17  ;;  %v203_v40 = vpop.permute.xlu2 %202 }
  0xab   :  { %v224_v59 = vmul.f32 %v970_v10, %v203_v40 }
  0xac   :  { %v276_v15 = vpop.permute.xlu1 %275  ;;  %v190_v30 = vadd.f32 %v183_v23, %v140_v27  ;;  %v297_v27 = vld [vmem:[%s1076_s5 + $0x28] sm:$0xff] }
  0xad   :  { %v284_v16 = vadd.f32 %v276_v15, %v235_v13  ;;  %v231_v6 = vadd.f32 %v224_v59, %v188_v62  ;;  %v413_v62 = vld [vmem:[%s1078_s7 + $0x8] sm:$0xff] }
  0xae   :  { %v233_v34 = vadd.f32 %v226_v31, %v190_v30 }
  0xaf   :  { %664 = vtanh.f32 %v284_v16 }
  0xb1   :  { %v266_v33 = vpop.permute.xlu0 %265 }
  0xb2   :  { %v282_v37 = vadd.f32 %v266_v33, %v233_v34  ;;  %v199_v46 = vpop.permute.xlu2 %198 }
  0xb5   :  { %v665_v20 = vpop.eup %664  ;;  %v106_v24 = vpop.permute.xlu1 %105 }
  0xb6   :  { %617 = vmatpush.msk.msra.mxu0 %vm363_vm0, %v665_v20  ;;  %633 = vmatpush.msk.msra.mxu2 %vm363_vm0, %v665_v20  ;;  %v130_v50 = vmul.f32 %v957_v0, %v106_v24  ;;  %v223_v0 = vmul.f32 %v970_v10, %v199_v46  ;;  %v293_v24 = vld [vmem:[%s1076_s5 + $0x8] sm:$0xff] }
  0xb8   :  { %v137_v11 = vadd.f32 %v130_v50, %v94_v2  ;;  %v414_v2 = vld [vmem:[%s1078_s7 + $0x10] sm:$0xff] }
  0xb9   :  { %v256_v3 = vpop.permute.xlu0 %255 }
  0xba   :  { %v195_v52 = vpop.permute.xlu2 %194  ;;  %v280_v12 = vadd.f32 %v256_v3, %v231_v6  ;;  %v418_v3 = vld [vmem:[%s1078_s7 + $0x30] sm:$0x3] }
  0xbb   :  { %v222_v14 = vmul.f32 %v970_v10, %v195_v52  ;;  %v292_v10 = vld [vmem:[%s1076_s5] sm:$0xff]  ;;  %v415_v52 = vld [vmem:[%s1078_s7 + $0x18] sm:$0xff] }
  0xbe   :  { %v271_v36 = vpop.permute.xlu1 %270 }
  0xbf   :  { %v283_v39 = vadd.f32 %v271_v36, %v234_v35 }
  0xc1   :  { %666 = vtanh.f32 %v283_v39  ;;  %v339_v32 = vpop.permute.xlu0 %338 }
  0xc2   :  { %668 = vtanh.f32 %v282_v37 }
  0xc3   :  { %v246_v16 = vpop.permute.xlu2 %245 }
  0xc6   :  { %v151_v41 = vpop.permute.xlu1 %150 }
  0xc7   :  { %v667_v42 = vpop.eup %666  ;;  %v180_v7 = vmul.f32 %v959_v1, %v151_v41 }
  0xc8   :  { %377 = vmatpush.msra.mxu0 %v667_v42  ;;  %634 = vmatpush.msra.mxu2 %v667_v42  ;;  %v669_v38 = vpop.eup %668 }
  0xc9   :  { %v187_v15 = vadd.f32 %v180_v7, %v137_v11  ;;  %v324_v37 = vpop.permute.xlu0 %323 }
  0xca   :  { %378 = vmatpush.msra.mxu0 %v669_v38  ;;  %635 = vmatpush.msra.mxu2 %v669_v38 }
  0xcb   :  { %v230_v5 = vadd.f32 %v223_v0, %v187_v15  ;;  %v329_v36 = vpop.permute.xlu2 %328 }
  0xce   :  { %v146_v53 = vpop.permute.xlu1 %145 }
  0xcf   :  { %v179_v56 = vmul.f32 %v959_v1, %v146_v53 }
  0xd1   :  { %v186_v13 = vadd.f32 %v179_v56, %v136_v4  ;;  %v309_v51 = vpop.permute.xlu0 %308  ;;  %v417_v56 = vld [vmem:[%s1078_s7 + $0x28] sm:$0xff]  ;;  %s734_s7 = smov [#allocation3]  }
  0xd2   :  { %s606_s17 = sshll.u32 %s734_s7, 4  ;;  %s607_s17 = int_to_ptr.vmem [resolvable:$true] %s606_s17 }
  0xd3   :  { %v229_v63 = vadd.f32 %v222_v14, %v186_v13  ;;  %v314_v47 = vpop.permute.xlu2 %313 }
  0xd5   :  { %v278_v19 = vadd.f32 %v246_v16, %v229_v63 }
  0xd6   :  { %v261_v9 = vpop.permute.xlu1 %260 }
  0xd7   :  { %v281_v57 = vadd.f32 %v261_v9, %v232_v8 }
  0xd9   :  { %670 = vtanh.f32 %v281_v57  ;;  %v439_v8 = vpop.permute.xlu0 %438 }
  0xda   :  { %672 = vtanh.f32 %v280_v12 }
  0xdb   :  { %v434_v4 = vpop.permute.xlu2 %433 }
  0xde   :  { %v251_v17 = vpop.permute.xlu1 %250 }
  0xdf   :  { %v671_v18 = vpop.eup %670  ;;  %v279_v1 = vadd.f32 %v251_v17, %v230_v5 }
  0xe0   :  { %379 = vmatpush.msra.mxu0 %v671_v18  ;;  %636 = vmatpush.msra.mxu2 %v671_v18  ;;  %v673_v20 = vpop.eup %672 }
  0xe1   :  { %674 = vtanh.f32 %v279_v1  ;;  %v454_v0 = vpop.permute.xlu0 %453 }
  0xe2   :  { %380 = vmatpush.msra.mxu0 %v673_v20  ;;  %637 = vmatpush.msra.mxu2 %v673_v20  ;;  %676 = vtanh.f32 %v278_v19 }
  0xe3   :  { %v449_v9 = vpop.permute.xlu2 %448 }
  0xe6   :  { %v334_v35 = vpop.permute.xlu1 %333 }
  0xe7   :  { %v675_v21 = vpop.eup %674 }
  0xe8   :  { %381 = vmatpush.msra.mxu0 %v675_v21  ;;  %638 = vmatpush.msra.mxu2 %v675_v21  ;;  %v677_v23 = vpop.eup %676 }
  0xea   :  { %382 = vmatpush.msra.mxu0 %v677_v23  ;;  %639 = vmatpush.msra.mxu2 %v677_v23 }
  0xeb   :  { %618 = vmatmul.msk.f32.vlgmr.msra.gmra.mxu0 %vm341_vm1, %v292_v10  ;;  %621 = vmatmul.msk.f32.vlgmr.msra.gmra.mxu2 %vm341_vm1, %v295_v22  ;;  %v540_v15 = vpop.permute.xlu2 %539  ;;  %v545_v10 = vpop.permute.xlu0 %544 }
  0xee   :  { %v319_v45 = vpop.permute.xlu1 %318 }
  0xf3   :  { %619 = vmatmul.msk.f32.gmra.mxu0 %vm341_vm1, %v293_v24  ;;  %622 = vmatmul.msk.f32.gmra.mxu2 %vm341_vm1, %v296_v25  ;;  %v555_v25 = vpop.permute.xlu2 %554 }
  0xf6   :  { %v429_v6 = vpop.permute.xlu1 %428 }
  0xfb   :  { %620 = vmatmul.msk.f32.gmra.mxu0 %vm341_vm1, %v294_v26  ;;  %623 = vmatmul.msk.f32.gmra.mxu2 %vm341_vm1, %v297_v27 }
  0xfe   :  { %v444_v12 = vpop.permute.xlu1 %443 }
 0x103   :  { %624 = vmatmul.msk.f32.gmra.mxu2 %vm341_vm1, %v298_v28 }
 0x106   :  { %v459_v16 = vpop.permute.xlu1 %458 }
 0x10e   :  { %v550_v27 = vpop.permute.xlu1 %549 }
 0x168   :  { %v384_v30 = vpop.f32.mrf.mxu0 }
 0x169   :  { %v385_v55 = vadd.f32 %v384_v30, %v309_v51 }
 0x16e   :  { %v393_v29 = vpop.f32.mrf.mxu2 }
 0x16f   :  { %v394_v43 = vadd.f32 %v393_v29, %v324_v37 }
 0x170   :  { %v387_v34 = vpop.f32.mrf.mxu0 }
 0x171   :  { %v388_v49 = vadd.f32 %v387_v34, %v314_v47 }
 0x176   :  { %v396_v31 = vpop.f32.mrf.mxu2 }
 0x177   :  { %v397_v42 = vadd.f32 %v396_v31, %v329_v36 }
 0x178   :  { %v390_v38 = vpop.f32.mrf.mxu0 }
 0x179   :  { %v391_v46 = vadd.f32 %v390_v38, %v319_v45  ;;  %v565_v38 = vpop.permute.xlu1 %564 }
 0x17e   :  { %v399_v33 = vpop.f32.mrf.mxu2 }
 0x17f   :  { %v400_v40 = vadd.f32 %v399_v33, %v334_v35 }
 0x186   :  { %v402_v39 = vpop.f32.mrf.mxu2 }
 0x187   :  { %v403_v41 = vadd.f32 %v402_v39, %v339_v32  ;;  %v560_v39 = vpop.permute.xlu0 %559 }
 0x189   :  { %678 = vtanh.f32 %v403_v41 }
 0x18a   :  { %680 = vtanh.f32 %v400_v40  ;;  %v570_v40 = vpop.permute.xlu2 %569 }
 0x18b   :  { %682 = vtanh.f32 %v397_v42 }
 0x18c   :  { %684 = vtanh.f32 %v394_v43 }
 0x18d   :  { %686 = vtanh.f32 %v391_v46 }
 0x18e   :  { %688 = vtanh.f32 %v388_v49 }
 0x18f   :  { %v679_v48 = vpop.eup %678  ;;  %690 = vtanh.f32 %v385_v55 }
 0x190   :  { %625 = vmatpush.msk.msra.mxu1 %vm363_vm0, %v679_v48  ;;  %640 = vmatpush.msk.msra.mxu3 %vm363_vm0, %v679_v48  ;;  %v681_v53 = vpop.eup %680 }
 0x191   :  { %v683_v44 = vpop.eup %682 }
 0x192   :  { %495 = vmatpush.msra.mxu1 %v681_v53  ;;  %641 = vmatpush.msra.mxu3 %v681_v53  ;;  %v685_v58 = vpop.eup %684 }
 0x193   :  { %v687_v54 = vpop.eup %686 }
 0x194   :  { %496 = vmatpush.msra.mxu1 %v683_v44  ;;  %642 = vmatpush.msra.mxu3 %v683_v44  ;;  %v689_v59 = vpop.eup %688 }
 0x195   :  { %v691_v50 = vpop.eup %690 }
 0x196   :  { %497 = vmatpush.msra.mxu1 %v685_v58  ;;  %643 = vmatpush.msra.mxu3 %v685_v58  ;;  %v596_v58 = vpop.permute.xlu0 %595 }
 0x198   :  { %498 = vmatpush.msra.mxu1 %v687_v54  ;;  %644 = vmatpush.msra.mxu3 %v687_v54 }
 0x19a   :  { %499 = vmatpush.msra.mxu1 %v689_v59  ;;  %645 = vmatpush.msra.mxu3 %v689_v59  ;;  %v598_v59 = vperm.slane %v596_v58, 0 }
 0x19c   :  { %500 = vmatpush.msra.mxu1 %v691_v50  ;;  %646 = vmatpush.msra.mxu3 %v691_v50 }
 0x19d   :  { %626 = vmatmul.msk.f32.vlgmr.msra.gmra.mxu1 %vm341_vm1, %v412_v60  ;;  %630 = vmatmul.msk.f32.vlgmr.msra.gmra.mxu3 %vm341_vm1, %v416_v61 }
 0x1a5   :  { %627 = vmatmul.msk.f32.gmra.mxu1 %vm341_vm1, %v413_v62  ;;  %631 = vmatmul.msk.f32.gmra.mxu3 %vm341_vm1, %v417_v56 }
 0x1ad   :  { %628 = vmatmul.msk.f32.gmra.mxu1 %vm341_vm1, %v414_v2  ;;  %632 = vmatmul.msk.f32.gmra.mxu3 %vm341_vm1, %v418_v3 }
 0x1b5   :  { %629 = vmatmul.msk.f32.gmra.mxu1 %vm341_vm1, %v415_v52 }
 0x21a   :  { %v502_v7 = vpop.f32.mrf.mxu1 }
 0x21b   :  { %v503_v63 = vadd.f32 %v502_v7, %v429_v6 }
 0x220   :  { %v514_v11 = vpop.f32.mrf.mxu3 }
 0x221   :  { %v515_v18 = vadd.f32 %v514_v11, %v449_v9 }
 0x222   :  { %v505_v13 = vpop.f32.mrf.mxu1 }
 0x223   :  { %v506_v14 = vadd.f32 %v505_v13, %v434_v4 }
 0x225   :  { %692 = vtanh.f32 %v506_v14 }
 0x226   :  { %694 = vtanh.f32 %v503_v63 }
 0x228   :  { %v517_v57 = vpop.f32.mrf.mxu3 }
 0x229   :  { %v518_v22 = vadd.f32 %v517_v57, %v454_v0 }
 0x22a   :  { %v508_v5 = vpop.f32.mrf.mxu1 }
 0x22b   :  { %v509_v17 = vadd.f32 %v508_v5, %v439_v8  ;;  %v693_v21 = vpop.eup %692 }
 0x22c   :  { %v695_v24 = vpop.eup %694  ;;  %v573_v28 = vmul.f32 %v693_v21, %v545_v10 }
 0x22d   :  { %696 = vtanh.f32 %v509_v17  ;;  %v572_v29 = vmul.f32 %v695_v24, %v540_v15 }
 0x22e   :  { %698 = vtanh.f32 %v515_v18 }
 0x22f   :  { %v579_v32 = vadd.f32 %v573_v28, %v572_v29 }
 0x230   :  { %v520_v19 = vpop.f32.mrf.mxu3 }
 0x231   :  { %v521_v1 = vadd.f32 %v520_v19, %v459_v16 }
 0x232   :  { %v511_v20 = vpop.f32.mrf.mxu1 }
 0x233   :  { %v512_v23 = vadd.f32 %v511_v20, %v444_v12  ;;  %v697_v26 = vpop.eup %696 }
 0x234   :  { %v574_v30 = vmul.f32 %v697_v26, %v550_v27  ;;  %v699_v31 = vpop.eup %698 }
 0x235   :  { %700 = vtanh.f32 %v512_v23  ;;  %v576_v41 = vmul.f32 %v699_v31, %v560_v39 }
 0x236   :  { %702 = vtanh.f32 %v521_v1  ;;  %v580_v35 = vadd.f32 %v579_v32, %v574_v30 }
 0x237   :  { %704 = vtanh.f32 %v518_v22 }
 0x23b   :  { %v701_v33 = vpop.eup %700 }
 0x23c   :  { %v703_v34 = vpop.eup %702  ;;  %v575_v36 = vmul.f32 %v701_v33, %v555_v25 }
 0x23d   :  { %v705_v37 = vpop.eup %704  ;;  %v578_v43 = vmul.f32 %v703_v34, %v570_v40 }
 0x23e   :  { %v581_v42 = vadd.f32 %v580_v35, %v575_v36  ;;  %v577_v45 = vmul.f32 %v705_v37, %v565_v38 }
 0x23f   :  { %v584_v48 = vsel %vm363_vm0, %v578_v43, 0.0 }
 0x240   :  { %v582_v46 = vadd.f32 %v581_v42, %v576_v41 }
 0x242   :  { %v583_v47 = vadd.f32 %v582_v46, %v577_v45 }
 0x244   :  { %v585_v49 = vadd.f32 %v584_v48, %v583_v47 }
 0x246   :  { %v586_v51 = vrot.slane %v585_v49, 4 }
 0x248   :  { %v587_v53 = vadd.f32 %v586_v51, %v585_v49 }
 0x24a   :  { %v588_v55 = vrot.slane %v587_v53, 2 }
 0x24c   :  { %v589_v44 = vadd.f32 %v588_v55, %v587_v53 }
 0x24e   :  { %v590_v54 = vrot.slane %v589_v44, 1 }
 0x250   :  { %v591_v60 = vadd.f32 %v590_v54, %v589_v44 }
 0x252   :  { %v599_v61 = vadd.f32 %v598_v59, %v591_v60 }
 0x254   :  { %600 = vst [vmem:[#allocation3] sm:$0x1] %v599_v61 }
 0x255   :  { %611 = dma.vmem_to_hbm [thread:$0]  %s607_s17, 16, %s609_s9, [#allocation4]  }
 0x256   :  { %730 = dma.done.wait [#allocation4], 16  }
 0x257   :  { %731 = vsyncadd [#allocation4], 4294967280 }
 0x258   :  { %616 = vsyncpa [#allocation4], 1 }

</bundles_post_ra>
